<compile_context>
chip_gen: v5e
topology: v5e:2x2
jax: 0.10.0
libtpu: 0.0.40
codegen_flags: <defaults>
</compile_context>

<pallas_src>
import functools

import jax
import jax.numpy as jnp
from jax.experimental import pallas as pl
from jax.experimental.pallas import tpu as pltpu


def _ce_kernel(logits_ref, labels_ref, out_ref, m_sc, l_sc, xl_sc):
    """One class-tile step of online log-sum-exp cross entropy.

    logits_ref: (B, TC) current class tile (native dtype, cast to f32 here)
    labels_ref: (B, 1) int32, resident across the grid
    out_ref:    (1, 1) f32 scalar in SMEM (written at the last step)
    m_sc/l_sc/xl_sc: (B, 1) f32 VMEM accumulators (running max / sum / label logit)
    """
    k = pl.program_id(0)
    nk = pl.num_programs(0)

    @pl.when(k == 0)
    def _init():
        m_sc[...] = jnp.full_like(m_sc, -jnp.inf)
        l_sc[...] = jnp.zeros_like(l_sc)
        xl_sc[...] = jnp.zeros_like(xl_sc)

    x = logits_ref[...].astype(jnp.float32)              # (B, TC)
    b, tc = x.shape

    # Accumulate the label logit: class ids in this tile are [k*TC, (k+1)*TC).
    cls = jax.lax.broadcasted_iota(jnp.int32, (b, tc), 1) + k * tc
    match = cls == labels_ref[...]                        # (B,1) -> (B,TC)
    xl_sc[...] += jnp.sum(jnp.where(match, x, 0.0), axis=-1, keepdims=True)

    # Online LSE update (rescale running sum by exp(m_old - m_new)).
    m_blk = jnp.max(x, axis=-1, keepdims=True)
    m_new = jnp.maximum(m_sc[...], m_blk)
    l_sc[...] = l_sc[...] * jnp.exp(m_sc[...] - m_new) + jnp.sum(
        jnp.exp(x - m_new), axis=-1, keepdims=True)
    m_sc[...] = m_new

    @pl.when(k == nk - 1)
    def _finalize():
        # nll = logsumexp(x) - x[label]  (logp never materialized)
        nll = (m_sc[...] + jnp.log(l_sc[...])) - xl_sc[...]   # (B, 1)
        out_ref[0, 0] = jnp.sum(nll) * (1.0 / b)              # mean reduction


def _pick_class_tile(c: int, target: int = 2048) -> int:
    """Lane-dense class tile: multiple of 128 dividing C, capped at `target`.

    Cap keeps 2 pipeline buffers small on v7x (32 MiB scoped VMEM) and v5e
    (16 MiB scoped VMEM). Falls back to the full class dim when C is small or
    has no suitable divisor (full-dim blocks are always legal).
    """
    if c <= target:
        return c
    for tc in range(target - target % 128, 127, -128):
        if c % tc == 0:
            return tc
    return c


@functools.partial(jax.jit, static_argnames=("seq_len", "class_tile"))
def _ce_pallas(inputs_tbc, labels_tb1, *, seq_len, class_tile):
    t, b, c = inputs_tbc.shape
    tc = class_tile
    grid = (c // tc,)

    out = pl.pallas_call(
        _ce_kernel,
        out_shape=jax.ShapeDtypeStruct((1, 1), jnp.float32),
        grid_spec=pltpu.PrefetchScalarGridSpec(
            num_scalar_prefetch=0,
            grid=grid,
            in_specs=[
                # Time row selected in the index_map: only (B, TC) tiles of the
                # seq_len row are DMA'd; leading T dim is squeezed out.
                pl.BlockSpec((None, b, tc), lambda k: (seq_len, 0, k)),
                # Labels column: constant index_map -> loaded once, stays resident.
                pl.BlockSpec((None, b, 1), lambda k: (seq_len, 0, 0)),
            ],
            out_specs=pl.BlockSpec(memory_space=pltpu.SMEM),
            scratch_shapes=[
                pltpu.VMEM((b, 1), jnp.float32),   # running max m
                pltpu.VMEM((b, 1), jnp.float32),   # running sum l
                pltpu.VMEM((b, 1), jnp.float32),   # label logit x_label
            ],
        ),
        compiler_params=pltpu.CompilerParams(
            dimension_semantics=("arbitrary",),    # class axis is a reduction
        ),
    )(inputs_tbc, labels_tb1)
    return out[0, 0]


def cross_entropy_per_sequence_length(inputs, labels, *, seq_len, batch_size,
                                      class_tile=None):
    """JAX/Pallas equivalent of CrossEntropyPerSequenceLength.forward."""
    n, c = inputs.shape
    t = n // batch_size
    if t <= seq_len:
        # Matches `return torch.tensor(0.0)`
        return jnp.float32(0.0)
    if class_tile is None or c % class_tile != 0:
        class_tile = _pick_class_tile(c)
    # Metadata-only reshapes (no HBM copy); the time slice happens in the
    # kernel's BlockSpec index_map.
    inputs_tbc = inputs.reshape(t, batch_size, c)
    labels_tb1 = labels.reshape(t, batch_size, 1).astype(jnp.int32)
    return _ce_pallas(inputs_tbc, labels_tb1,
                      seq_len=seq_len, class_tile=class_tile)


def _reference(inputs, labels, *, seq_len, batch_size):
    """Pure-JAX reference for correctness checking."""
    n, c = inputs.shape
    t = n // batch_size
    if t <= seq_len:
        return jnp.float32(0.0)
    logits = inputs.reshape(t, batch_size, c)[seq_len].astype(jnp.float32)
    labs = labels.reshape(t, batch_size)[seq_len]
    logp = jax.nn.log_softmax(logits, axis=-1)
    nll = -jnp.take_along_axis(logp, labs[:, None].astype(jnp.int32), axis=-1)
    return jnp.mean(nll)


if __name__ == "__main__":
    # Module config (synthetic, deterministic) — matches the module's forward.
    batch_size = 8
    seq_total = 16       # T = inputs.shape[0] // batch_size
    num_classes = 32
    seq_len = 3          # time index to evaluate CE at

    key = jax.random.PRNGKey(0)
    k_x, k_y = jax.random.split(key)

    n = seq_total * batch_size
    inputs = jax.random.normal(k_x, (n, num_classes), dtype=jnp.float32)
    labels = jax.random.randint(k_y, (n,), 0, num_classes, dtype=jnp.int32)

    loss = cross_entropy_per_sequence_length(
        inputs, labels, seq_len=seq_len, batch_size=batch_size)
    loss = jax.block_until_ready(loss)

    ref = _reference(inputs, labels, seq_len=seq_len, batch_size=batch_size)
    assert jnp.allclose(loss, ref, rtol=1e-5, atol=1e-5), (loss, ref)

    # Multi-block (online-LSE) path: C=512 tiled into 128-wide class blocks.
    c2 = 512
    k_x2, k_y2 = jax.random.split(jax.random.PRNGKey(1))
    inputs2 = jax.random.normal(k_x2, (n, c2), dtype=jnp.float32)
    labels2 = jax.random.randint(k_y2, (n,), 0, c2, dtype=jnp.int32)
    loss2 = cross_entropy_per_sequence_length(
        inputs2, labels2, seq_len=seq_len, batch_size=batch_size,
        class_tile=128)
    loss2 = jax.block_until_ready(loss2)
    ref2 = _reference(inputs2, labels2, seq_len=seq_len, batch_size=batch_size)
    assert jnp.allclose(loss2, ref2, rtol=1e-5, atol=1e-5), (loss2, ref2)

    # Early-exit branch (T <= seq_len) returns 0.0, matching the PyTorch module.
    zero = cross_entropy_per_sequence_length(
        inputs, labels, seq_len=seq_total, batch_size=batch_size)
    assert float(zero) == 0.0

    print("KERNEL_OK")
</pallas_src>

<mosaic_0001>
module attributes {stable_mosaic.version = 11 : i64} {
  func.func @_ce_kernel(%arg0: i32, %arg1: memref<1x8x32xf32, #tpu.memory_space<vmem>>, %arg2: memref<1x8x1xi32, #tpu.memory_space<vmem>>, %arg3: memref<1x1xf32, #tpu.memory_space<smem>>, %arg4: memref<8x1xf32, #tpu.memory_space<vmem>>, %arg5: memref<8x1xf32, #tpu.memory_space<vmem>>, %arg6: memref<8x1xf32, #tpu.memory_space<vmem>>) attributes {dimension_semantics = [#tpu.dimension_semantics<arbitrary>], iteration_bounds = array<i64: 1>, scalar_prefetch = 0 : i64, scratch_operands = 3 : i64, tpu.core_type = #tpu.core_type<tc>, window_params = [{transform_indices = @transform_0, window_bounds = array<i64: 1, 8, 32>}, {transform_indices = @transform_1, window_bounds = array<i64: 1, 8, 1>}, {transform_indices = @transform_2, window_bounds = array<i64: 1, 1>}]} {
    %c0_i32 = arith.constant 0 : i32
    %0 = arith.cmpi eq, %arg0, %c0_i32 : i32
    %1 = arith.extui %0 : i1 to i32
    %c0_i32_0 = arith.constant 0 : i32
    %2 = arith.cmpi ne, %1, %c0_i32_0 : i32
    scf.if %2 {
      %cst_25 = arith.constant 0xFF800000 : f32
      %40 = vector.broadcast %cst_25 : f32 to vector<8x1xf32>
      %c0_26 = arith.constant 0 : index
      %c0_27 = arith.constant 0 : index
      %41 = vector.load %arg4[%c0_26, %c0_27] : memref<8x1xf32, #tpu.memory_space<vmem>>, vector<8x1xf32>
      tpu.vector_store %arg4[%c0_26, %c0_27], %40 {strides = array<i32>} : memref<8x1xf32, #tpu.memory_space<vmem>>, vector<8x1xf32>,
      %cst_28 = arith.constant 0.000000e+00 : f32
      %42 = vector.broadcast %cst_28 : f32 to vector<8x1xf32>
      %c0_29 = arith.constant 0 : index
      %c0_30 = arith.constant 0 : index
      %43 = vector.load %arg5[%c0_29, %c0_30] : memref<8x1xf32, #tpu.memory_space<vmem>>, vector<8x1xf32>
      tpu.vector_store %arg5[%c0_29, %c0_30], %42 {strides = array<i32>} : memref<8x1xf32, #tpu.memory_space<vmem>>, vector<8x1xf32>,
      %cst_31 = arith.constant 0.000000e+00 : f32
      %44 = vector.broadcast %cst_31 : f32 to vector<8x1xf32>
      %c0_32 = arith.constant 0 : index
      %c0_33 = arith.constant 0 : index
      %45 = vector.load %arg6[%c0_32, %c0_33] : memref<8x1xf32, #tpu.memory_space<vmem>>, vector<8x1xf32>
      tpu.vector_store %arg6[%c0_32, %c0_33], %44 {strides = array<i32>} : memref<8x1xf32, #tpu.memory_space<vmem>>, vector<8x1xf32>,
    } else {
    }
    %c0 = arith.constant 0 : index
    %c0_1 = arith.constant 0 : index
    %c0_2 = arith.constant 0 : index
    %3 = vector.load %arg1[%c0, %c0_1, %c0_2] : memref<1x8x32xf32, #tpu.memory_space<vmem>>, vector<1x8x32xf32>
    %4 = vector.shape_cast %3 : vector<1x8x32xf32> to vector<8x32xf32>
    %5 = tpu.iota {dimensions = array<i32: 1>} : vector<8x32xi32>
    %c32_i32 = arith.constant 32 : i32
    %6 = arith.muli %arg0, %c32_i32 : i32
    %7 = vector.broadcast %6 : i32 to vector<8x32xi32>
    %8 = arith.addi %5, %7 : vector<8x32xi32>
    %c0_3 = arith.constant 0 : index
    %c0_4 = arith.constant 0 : index
    %c0_5 = arith.constant 0 : index
    %9 = vector.load %arg2[%c0_3, %c0_4, %c0_5] : memref<1x8x1xi32, #tpu.memory_space<vmem>>, vector<1x8x1xi32>
    %10 = vector.shape_cast %9 : vector<1x8x1xi32> to vector<8x1xi32>
    %11 = vector.broadcast %10 : vector<8x1xi32> to vector<8x32xi32>
    %12 = arith.cmpi eq, %8, %11 : vector<8x32xi32>
    %c0_6 = arith.constant 0 : index
    %c0_7 = arith.constant 0 : index
    %13 = vector.load %arg6[%c0_6, %c0_7] : memref<8x1xf32, #tpu.memory_space<vmem>>, vector<8x1xf32>
    %cst = arith.constant 0.000000e+00 : f32
    %14 = vector.broadcast %cst : f32 to vector<8x32xf32>
    %15 = arith.select %12, %4, %14 : vector<8x32xi1>, vector<8x32xf32>
    %cst_8 = arith.constant dense<0.000000e+00> : vector<8xf32>
    %16 = vector.multi_reduction <add>, %15, %cst_8 [1] : vector<8x32xf32> to vector<8xf32>
    %17 = vector.shape_cast %16 : vector<8xf32> to vector<8x1xf32>
    %18 = arith.addf %13, %17 : vector<8x1xf32>
    %c0_9 = arith.constant 0 : index
    %c0_10 = arith.constant 0 : index
    %19 = vector.load %arg6[%c0_9, %c0_10] : memref<8x1xf32, #tpu.memory_space<vmem>>, vector<8x1xf32>
    tpu.vector_store %arg6[%c0_9, %c0_10], %18 {strides = array<i32>} : memref<8x1xf32, #tpu.memory_space<vmem>>, vector<8x1xf32>,
    %cst_11 = arith.constant dense<0xFF800000> : vector<8xf32>
    %20 = vector.multi_reduction <maximumf>, %4, %cst_11 [1] : vector<8x32xf32> to vector<8xf32>
    %21 = vector.shape_cast %20 : vector<8xf32> to vector<8x1xf32>
    %c0_12 = arith.constant 0 : index
    %c0_13 = arith.constant 0 : index
    %22 = vector.load %arg4[%c0_12, %c0_13] : memref<8x1xf32, #tpu.memory_space<vmem>>, vector<8x1xf32>
    %23 = arith.maximumf %22, %21 : vector<8x1xf32>
    %c0_14 = arith.constant 0 : index
    %c0_15 = arith.constant 0 : index
    %24 = vector.load %arg5[%c0_14, %c0_15] : memref<8x1xf32, #tpu.memory_space<vmem>>, vector<8x1xf32>
    %c0_16 = arith.constant 0 : index
    %c0_17 = arith.constant 0 : index
    %25 = vector.load %arg4[%c0_16, %c0_17] : memref<8x1xf32, #tpu.memory_space<vmem>>, vector<8x1xf32>
    %26 = arith.subf %25, %23 : vector<8x1xf32>
    %27 = math.exp %26 : vector<8x1xf32>
    %28 = arith.mulf %24, %27 : vector<8x1xf32>
    %29 = vector.broadcast %23 : vector<8x1xf32> to vector<8x32xf32>
    %30 = arith.subf %4, %29 : vector<8x32xf32>
    %31 = math.exp %30 : vector<8x32xf32>
    %cst_18 = arith.constant dense<0.000000e+00> : vector<8xf32>
    %32 = vector.multi_reduction <add>, %31, %cst_18 [1] : vector<8x32xf32> to vector<8xf32>
    %33 = vector.shape_cast %32 : vector<8xf32> to vector<8x1xf32>
    %34 = arith.addf %28, %33 : vector<8x1xf32>
    %c0_19 = arith.constant 0 : index
    %c0_20 = arith.constant 0 : index
    %35 = vector.load %arg5[%c0_19, %c0_20] : memref<8x1xf32, #tpu.memory_space<vmem>>, vector<8x1xf32>
    tpu.vector_store %arg5[%c0_19, %c0_20], %34 {strides = array<i32>} : memref<8x1xf32, #tpu.memory_space<vmem>>, vector<8x1xf32>,
    %c0_21 = arith.constant 0 : index
    %c0_22 = arith.constant 0 : index
    %36 = vector.load %arg4[%c0_21, %c0_22] : memref<8x1xf32, #tpu.memory_space<vmem>>, vector<8x1xf32>
    tpu.vector_store %arg4[%c0_21, %c0_22], %23 {strides = array<i32>} : memref<8x1xf32, #tpu.memory_space<vmem>>, vector<8x1xf32>,
    %c0_i32_23 = arith.constant 0 : i32
    %37 = arith.cmpi eq, %arg0, %c0_i32_23 : i32
    %38 = arith.extui %37 : i1 to i32
    %c0_i32_24 = arith.constant 0 : i32
    %39 = arith.cmpi ne, %38, %c0_i32_24 : i32
    scf.if %39 {
      %c0_25 = arith.constant 0 : index
      %c0_26 = arith.constant 0 : index
      %40 = vector.load %arg4[%c0_25, %c0_26] : memref<8x1xf32, #tpu.memory_space<vmem>>, vector<8x1xf32>
      %c0_27 = arith.constant 0 : index
      %c0_28 = arith.constant 0 : index
      %41 = vector.load %arg5[%c0_27, %c0_28] : memref<8x1xf32, #tpu.memory_space<vmem>>, vector<8x1xf32>
      %42 = math.log %41 : vector<8x1xf32>
      %43 = arith.addf %40, %42 : vector<8x1xf32>
      %c0_29 = arith.constant 0 : index
      %c0_30 = arith.constant 0 : index
      %44 = vector.load %arg6[%c0_29, %c0_30] : memref<8x1xf32, #tpu.memory_space<vmem>>, vector<8x1xf32>
      %45 = arith.subf %43, %44 : vector<8x1xf32>
      %46 = vector.shape_cast %45 : vector<8x1xf32> to vector<1x8x1xf32>
      %cst_31 = arith.constant dense<0.000000e+00> : vector<1xf32>
      %47 = vector.multi_reduction <add>, %46, %cst_31 [1, 2] : vector<1x8x1xf32> to vector<1xf32>
      %48 = vector.shape_cast %47 : vector<1xf32> to vector<1x1x1xf32>
      %49 = vector.extract %48[0, 0, 0] : f32 from vector<1x1x1xf32>
      %cst_32 = arith.constant 1.250000e-01 : f32
      %50 = arith.mulf %49, %cst_32 : f32
      %c0_33 = arith.constant 0 : index
      %c0_34 = arith.constant 0 : index
      %51 = memref.load %arg3[%c0_33, %c0_34] : memref<1x1xf32, #tpu.memory_space<smem>>
      memref.store %50, %arg3[%c0_33, %c0_34] : memref<1x1xf32, #tpu.memory_space<smem>>
    } else {
    }
    return
  }
  func.func @transform_0(%arg0: i32) -> (i32, i32, i32) {
    %c3_i32 = arith.constant 3 : i32
    %c0_i32 = arith.constant 0 : i32
    %c0_i32_0 = arith.constant 0 : i32
    return %c3_i32, %c0_i32, %arg0 : i32, i32, i32
  }
  func.func @transform_1(%arg0: i32) -> (i32, i32, i32) {
    %c3_i32 = arith.constant 3 : i32
    %c0_i32 = arith.constant 0 : i32
    %c0_i32_0 = arith.constant 0 : i32
    %c0_i32_1 = arith.constant 0 : i32
    return %c3_i32, %c0_i32, %c0_i32_0 : i32, i32, i32
  }
  func.func @transform_2(%arg0: i32) -> (i32, i32) {
    %c0_i32 = arith.constant 0 : i32
    %c0_i32_0 = arith.constant 0 : i32
    %c0_i32_1 = arith.constant 0 : i32
    return %c0_i32, %c0_i32_0 : i32, i32
  }
}

</mosaic_0001>

<bundles_post_ra>
// kernel: _ce_pallas.1
= control target key start
LH: loop header
LB: loop body
LE: loop exit
PB: predicated region body
PF: predicated region fallthrough
CT: control target
= control target key end

     0   :  { %vm39_vm0 = vcmask 261120   ;;  %s176_s0 = inlined_call_operand.vmem [shape: f32[16,8,32], index: 0, kind: input, shape index: {}]   ;;  %s177_s1 = inlined_call_operand.vmem [shape: s32[16,8,1], index: 1, kind: input, shape index: {}]   ;;  %s178_s2 = inlined_call_operand.hbm [shape: f32[1,1], index: 2, kind: output, shape index: {}]  }
   0x1   :  { %v108_v0 = vld [vmem:[%s176_s0 + $0x18] sm:$0xff] }
   0x2   :  { %7 = vsyncpa [#allocation6], 0  ;;  %v46_v1 = vsel %vm39_vm0, %v108_v0, -inf  ;;  %vm22_vm1 = vcmask 7168   ;;  %v138_v2 = vmov -inf   ;;  %v139_v3 = vmov 0  }
   0x3   :  { %47 = vmax.xlane.f32.xlu0 %v46_v1  ;;  %23 = vst.msk [vmem:[#allocation2] sm:$0xff] %vm22_vm1, %v138_v2  ;;  %117 = vset.pattern.permute.xlu1 %v139_v3  ;;  %v140_v4 = vmov 0.0   ;;  %v109_v5 = vld [vmem:[%s177_s1 + $0x18] sm:$0xff]  ;;  %v27_v10 = vlaneseq  ;;  %s98_s13 = sshll.u32 %s178_s2, 4  ;;  %s141_s16 = smov [#allocation5]   ;;  %s99_s13 = int_to_ptr.hbm [resolvable:$true] %s98_s13 }
   0x4   :  { %116 = vset.pattern.permute.xlu0 %v139_v3  ;;  %24 = vst.msk [vmem:[#allocation3] sm:$0xff] %vm22_vm1, %v140_v4  ;;  %34 = vperm.xlu1 %117, %v109_v5  }
   0x5   :  { %25 = vst.msk [vmem:[#allocation4] sm:$0xff] %vm22_vm1, %v140_v4  ;;  %v28_v12 = vand.u32 127, %v27_v10 }
   0xa   :  { %v49_v6 = vld [vmem:[#allocation2] sm:$0xff] }
   0xb   :  { %v51_v25 = vld [vmem:[#allocation3] sm:$0xff] }
   0xc   :  { %v37_v20 = vld [vmem:[#allocation4] sm:$0xff] }
  0x76   :  { %v48_v7 = vpop.xlane.xlu0 %47  ;;  %v35_v11 = vpop.permute.xlu1 %34 }
  0x77   :  { %v50_v8 = vmax.f32 %v49_v6, %v48_v7  ;;  %vm36_vm2 = vcmp.eq.s32.totalorder %v28_v12, %v35_v11 }
  0x78   :  { %v38_v13 = vsel %vm36_vm2, %v108_v0, 0.0 }
  0x79   :  { %v52_v9 = vsub.f32 %v49_v6, %v50_v8  ;;  %69 = vst.msk [vmem:[#allocation2] sm:$0xff] %vm22_vm1, %v50_v8  ;;  %58 = vperm.xlu0 %116, %v50_v8   ;;  %v40_v14 = vsel %vm39_vm0, %v38_v13, 0.0 }
  0x7a   :  { %41 = vadd.xlane.f32.xlu2 %v40_v14 }
  0x7b   :  { %v53_v23 = vmul.f32 1.442695, %v52_v9 }
  0x80   :  { %v73_v32 = vld [vmem:[#allocation2] sm:$0xff] }
  0xeb   :  { %v59_v15 = vpop.permute.xlu0 %58 }
  0xec   :  { %v61_v16 = vsub.f32 %v108_v0, %v59_v15 }
  0xed   :  { %v42_v21 = vpop.xlane.xlu2 %41 }
  0xee   :  { %v62_v17 = vmul.f32 1.442695, %v61_v16  ;;  %v43_v22 = vadd.f32 %v42_v21, %v37_v20 }
  0xf0   :  { %118 = vpow2.f32 %v62_v17  ;;  %45 = vst.msk [vmem:[#allocation4] sm:$0xff] %vm22_vm1, %v43_v22 }
  0xf1   :  { %120 = vpow2.f32 %v53_v23 }
  0xf6   :  { %v119_v18 = vpop.eup %118 }
  0xf7   :  { %v64_v19 = vsel %vm39_vm0, %v119_v18, 0.0  ;;  %v121_v24 = vpop.eup %120  ;;  %v78_v33 = vld [vmem:[#allocation4] sm:$0xff] }
  0xf8   :  { %65 = vadd.xlane.f32.xlu1 %v64_v19  ;;  %v55_v26 = vmul.f32 %v121_v24, %v51_v25 }
 0x16b   :  { %v66_v27 = vpop.xlane.xlu1 %65 }
 0x16c   :  { %v67_v28 = vadd.f32 %v66_v27, %v55_v26 }
 0x16e   :  { %68 = vst.msk [vmem:[#allocation3] sm:$0xff] %vm22_vm1, %v67_v28 }
 0x175   :  { %v74_v29 = vld [vmem:[#allocation3] sm:$0xff] }
 0x176   :  { %122 = vlog2.f32 %v74_v29 }
 0x17c   :  { %v123_v30 = vpop.eup %122 }
 0x17d   :  { %v76_v31 = vmul.f32 0.6931472, %v123_v30 }
 0x17f   :  { %v77_v34 = vadd.f32 %v76_v31, %v73_v32 }
 0x181   :  { %v79_v35 = vsub.f32 %v77_v34, %v78_v33 }
 0x183   :  { %v80_v36 = vsel %vm22_vm1, %v79_v35, 0.0 }
 0x184   :  { %81 = vadd.xlane.f32.xlu2 %v80_v36 }
 0x1f7   :  { %v82_v37 = vpop.xlane.xlu2 %81 }
 0x1f8   :  { %v83_v38 = vrot.slane %v82_v37, 4 }
 0x1fa   :  { %v84_v39 = vadd.f32 %v83_v38, %v82_v37 }
 0x1fc   :  { %v85_v40 = vrot.slane %v84_v39, 2 }
 0x1fe   :  { %v86_v41 = vadd.f32 %v85_v40, %v84_v39 }
 0x200   :  { %v87_v42 = vrot.slane %v86_v41, 1 }
 0x202   :  { %v88_v43 = vadd.f32 %v87_v42, %v86_v41 }
 0x204   :  { %110 = vpush %v88_v43 }
 0x235   :  { %s111_s14 = spop %110 }
 0x236   :  { %s90_s15 = smul.f32 0.125, %s111_s14 }
 0x238   :  { %92 = sst [smem:[#allocation5]] %s90_s15 }
 0x239   :  { %101 = dma.smem_to_hbm %s141_s16, 16, %s99_s13, [#allocation6]  }
 0x23a   :  { %136 = dma.done.wait [#allocation6], 16  }
 0x23b   :  { %137 = vsyncadd [#allocation6], 4294967280 }
 0x23c   :  { %106 = sfence }
 0x23d   :  { %107 = vsyncpa [#allocation6], 1 }

</bundles_post_ra>
